<compile_context>
chip_gen: v5e
topology: v5e:2x2
jax: 0.10.0
libtpu: 0.0.40
codegen_flags: <defaults>
</compile_context>

<pallas_src>
import functools
import math

import jax
import jax.numpy as jnp
from jax.experimental import pallas as pl
from jax.experimental.pallas import tpu as pltpu


# ----------------------------------------------------------------------------
# Rotation-matrix construction (exact port of the PyTorch _get_rotation_matrix)
# ----------------------------------------------------------------------------
def _get_rotation_matrix(thetas):
    bs, g = thetas.shape
    t = thetas.reshape(-1)
    x = jnp.cos(t)
    y = jnp.sin(t)
    a = x - y
    b = x * y
    c = x + y
    z = jnp.zeros_like(x)
    o = jnp.ones_like(x)

    pos_rows = [
        [a, 1 - a, z, z, z, z, z, z, z],
        [z, x - b, b, z, 1 - c + b, y - b, z, z, z],
        [z, z, a, z, z, 1 - a, z, z, z],
        [b, y - b, z, x - b, 1 - c + b, z, z, z, z],
        [z, z, z, z, o, z, z, z, z],
        [z, z, z, z, 1 - c + b, x - b, z, y - b, b],
        [z, z, z, 1 - a, z, z, a, z, z],
        [z, z, z, y - b, 1 - c + b, z, b, x - b, z],
        [z, z, z, z, z, z, z, 1 - a, a],
    ]
    neg_rows = [
        [c, z, z, 1 - c, z, z, z, z, z],
        [-b, x + b, z, b - y, 1 - a - b, z, z, z, z],
        [z, 1 - c, c, z, z, z, z, z, z],
        [z, z, z, x + b, 1 - a - b, z, -b, b - y, z],
        [z, z, z, z, o, z, z, z, z],
        [z, b - y, -b, z, 1 - a - b, x + b, z, z, z],
        [z, z, z, z, z, z, c, 1 - c, z],
        [z, z, z, z, 1 - a - b, b - y, z, x + b, -b],
        [z, z, z, z, z, 1 - c, z, z, c],
    ]
    pos = jnp.stack([jnp.stack(r, axis=-1) for r in pos_rows], axis=-2)  # (n, 9, 9)
    neg = jnp.stack([jnp.stack(r, axis=-1) for r in neg_rows], axis=-2)  # (n, 9, 9)
    mask = (t >= 0).astype(thetas.dtype)[:, None, None]
    rot = mask * pos + (1.0 - mask) * neg
    return rot.reshape(bs, g, 9, 9)


# ----------------------------------------------------------------------------
# Wrapper-side weight rotation (exact semantics of batch_rotate_multiweight_fast,
# including its (Cpg, G) -> (G, Cpg) output-channel reordering), as one einsum.
# ----------------------------------------------------------------------------
def _rotated_weights(weight, alphas, thetas, num_groups):
    """Returns (B, Cout, 9, Cin): output channel cout = g*Cpg + o1 is built from
    base-weight channel o1*G + g mixed by group-g's rotation matrix."""
    B, G = thetas.shape
    _, Cout, Cin, _, _ = weight.shape
    Cpg = Cout // G
    rot = _get_rotation_matrix(thetas) * alphas[:, :, None, None]        # (B, G, 9, 9)
    w = weight[0].reshape(Cout, Cin, 9)
    w_g = w.reshape(Cpg, G, Cin, 9)                                      # base cout = o1*G + g
    rw = jnp.einsum('bgkj,ogcj->bgock', rot, w_g)                        # (B, G, Cpg, Cin, 9)
    rw = rw.reshape(B, Cout, Cin, 9)                                     # out cout = g*Cpg + o1
    return jnp.transpose(rw, (0, 1, 3, 2))                               # (B, Cout, 9, Cin)


# ----------------------------------------------------------------------------
# Pallas kernel: one fused (Cout, 9*Cin) @ (9*Cin, H*Wp) MXU matmul per batch.
# ----------------------------------------------------------------------------
def _arc_conv_kernel(w_ref, x_ref, o_ref, *, wp):
    # w_ref: (1, Cout, 9*Cin)  bf16  rotated weights (tap-major, Cin-minor)
    # x_ref: (1, Cin, SP)      f32   zero-padded, spatially flattened input
    # o_ref: (1, Cout, L)      f32   L = H*Wp; columns >= W of each row are junk
    L = o_ref.shape[2]
    taps = []
    for kh in range(3):
        for kw in range(3):
            d = kh * wp + kw                         # static shift per tap
            taps.append(x_ref[0, :, d:d + L])        # (Cin, L) contiguous slice
    patch = jnp.concatenate(taps, axis=0).astype(jnp.bfloat16)   # (9*Cin, L)
    o_ref[0] = jnp.dot(w_ref[0], patch,
                       preferred_element_type=jnp.float32).astype(o_ref.dtype)


def adaptive_rotated_conv2d(x_nchw, weight, alphas, thetas, num_groups):
    """x_nchw: [B, Cin, H, W]; weight: [1, Cout, Cin, 3, 3]; alphas/thetas: [B, G]."""
    assert thetas.shape == alphas.shape
    B, Cin, H, W = x_nchw.shape
    _, Cout, _, k, _ = weight.shape
    assert k == 3 and Cout % num_groups == 0
    Wp = W + 2
    SP = (H + 3) * Wp          # 1 top pad row, 2 bottom pad rows (slack for last shift)
    L = H * Wp

    # Rotated per-batch weights -> MXU LHS (B, Cout, 9*Cin) in bf16.
    rw = _rotated_weights(weight, alphas, thetas, num_groups)            # (B, Cout, 9, Cin)
    rw = rw.reshape(B, Cout, 9 * Cin).astype(jnp.bfloat16)

    # Zero-padded, spatially flattened input: channels on sublanes, space on lanes.
    x_pad = jnp.pad(x_nchw.astype(jnp.float32),
                    ((0, 0), (0, 0), (1, 2), (1, 1)))                    # (B, Cin, H+3, W+2)
    x_flat = x_pad.reshape(B, Cin, SP)

    out = pl.pallas_call(
        functools.partial(_arc_conv_kernel, wp=Wp),
        out_shape=jax.ShapeDtypeStruct((B, Cout, L), jnp.float32),
        grid_spec=pltpu.PrefetchScalarGridSpec(
            num_scalar_prefetch=0,
            grid=(B,),
            in_specs=[
                pl.BlockSpec((1, Cout, 9 * Cin), lambda b: (b, 0, 0)),
                pl.BlockSpec((1, Cin, SP), lambda b: (b, 0, 0)),
            ],
            out_specs=pl.BlockSpec((1, Cout, L), lambda b: (b, 0, 0)),
        ),
        compiler_params=pltpu.CompilerParams(
            dimension_semantics=("parallel",),
            vmem_limit_bytes=32 * 1024 * 1024,
        ),
    )(rw, x_flat)

    # (B, Cout, H, Wp) -> drop the 2 junk columns per row -> NCHW, no transpose.
    return out.reshape(B, Cout, H, Wp)[:, :, :, :W]


# ----------------------------------------------------------------------------
# Deterministic routing head (the PyTorch module takes `rounting_func` as an
# external argument; here: global average pool + linear heads).
# ----------------------------------------------------------------------------
def make_routing_params(key, in_channels, num_groups):
    ka, kt = jax.random.split(key)
    wa = 0.5 * jax.random.normal(ka, (in_channels, num_groups), jnp.float32)
    wt = 0.5 * jax.random.normal(kt, (in_channels, num_groups), jnp.float32)
    return wa, wt


def routing_func(x_nchw, wa, wt):
    feat = jnp.mean(x_nchw, axis=(2, 3))                  # (B, Cin)
    alphas = jax.nn.sigmoid(feat @ wa)                    # (B, G)
    angles = (jnp.pi / 4.0) * jnp.tanh(feat @ wt)         # (B, G)
    return alphas, angles


# ----------------------------------------------------------------------------
# Pure-JAX reference: literal port of batch_rotate_multiweight_fast (view /
# permute / bmm chain) + per-batch conv (== one grouped conv with groups=B).
# ----------------------------------------------------------------------------
def _batch_rotate_multiweight_fast_ref(weights, lambdas, thetas):
    w = weights[0]                                      # (Cout, Cin, 3, 3)
    bs, g = thetas.shape
    Cout, Cin = w.shape[0], w.shape[1]
    rot = _get_rotation_matrix(thetas) * lambdas[:, :, None, None]
    Bm = w.reshape(1, Cout // g, g, Cin, 9, 1).transpose(0, 2, 1, 3, 4, 5)
    a, b, c, d, e, f = bs, g, 9, 9, Cout // g, Cin
    A = rot.reshape(a, b, c, d).transpose(1, 0, 2, 3).reshape(b, a * c, d)   # (g, bs*9, 9)
    Bm = Bm.reshape(b, e, f, d).transpose(0, 3, 1, 2).reshape(b, d, e * f)   # (g, 9, Cpg*Cin)
    res = jnp.matmul(A, Bm).reshape(b, a, c, e, f).transpose(1, 0, 3, 4, 2)  # (bs,g,Cpg,Cin,9)
    return res.reshape(bs * Cout, Cin, 3, 3)


def reference_forward(x, weight, alphas, thetas, num_groups):
    B, Cin, H, W = x.shape
    Cout = weight.shape[1]
    rw = _batch_rotate_multiweight_fast_ref(weight, alphas, thetas)
    rw = rw.reshape(B, Cout, Cin, 3, 3)

    def one(xb, wb):
        return jax.lax.conv_general_dilated(
            xb[None], wb, window_strides=(1, 1), padding=((1, 1), (1, 1)),
            dimension_numbers=("NCHW", "OIHW", "NCHW"))[0]

    return jax.vmap(one)(x, rw)


if __name__ == "__main__":
    B, Cin, Cout, H, W, G, ksz = 2, 4, 4, 16, 16, 2, 3

    key = jax.random.PRNGKey(0)
    k_x, k_w, k_r = jax.random.split(key, 3)

    x = jax.random.normal(k_x, (B, Cin, H, W), jnp.float32)

    # kaiming_normal_(mode='fan_out', relu) on a (1, Cout, Cin, k, k) tensor.
    fan_out = 1 * Cin * ksz * ksz
    std = math.sqrt(2.0 / fan_out)
    weight = std * jax.random.normal(k_w, (1, Cout, Cin, ksz, ksz), jnp.float32)

    wa, wt = make_routing_params(k_r, Cin, G)
    alphas, angles = routing_func(x, wa, wt)

    out = adaptive_rotated_conv2d(x, weight, alphas, angles, num_groups=G)
    out = jax.block_until_ready(out)

    ref = reference_forward(x, weight, alphas, angles, G)
    assert out.shape == (B, Cout, H, W), out.shape
    max_err = float(jnp.max(jnp.abs(out - ref)))
    assert max_err < 3e-2, f"mismatch vs reference: {max_err}"

    print("KERNEL_OK")
</pallas_src>

<mosaic_0001>
module attributes {stable_mosaic.version = 11 : i64} {
  func.func @_arc_conv_kernel(%arg0: i32, %arg1: memref<1x4x36xbf16, #tpu.memory_space<vmem>>, %arg2: memref<1x4x342xf32, #tpu.memory_space<vmem>>, %arg3: memref<1x4x288xf32, #tpu.memory_space<vmem>>) attributes {dimension_semantics = [#tpu.dimension_semantics<parallel>], iteration_bounds = array<i64: 2>, scalar_prefetch = 0 : i64, scratch_operands = 0 : i64, tpu.core_type = #tpu.core_type<tc>, window_params = [{transform_indices = @transform_0, window_bounds = array<i64: 1, 4, 36>}, {transform_indices = @transform_1, window_bounds = array<i64: 1, 4, 342>}, {transform_indices = @transform_2, window_bounds = array<i64: 1, 4, 288>}]} {
    %c0 = arith.constant 0 : index
    %c0_0 = arith.constant 0 : index
    %c0_1 = arith.constant 0 : index
    %0 = vector.load %arg2[%c0, %c0_0, %c0_1] : memref<1x4x342xf32, #tpu.memory_space<vmem>>, vector<1x4x288xf32>
    %1 = vector.shape_cast %0 : vector<1x4x288xf32> to vector<4x288xf32>
    %c0_2 = arith.constant 0 : index
    %c0_3 = arith.constant 0 : index
    %c1 = arith.constant 1 : index
    %2 = vector.load %arg2[%c0_2, %c0_3, %c1] : memref<1x4x342xf32, #tpu.memory_space<vmem>>, vector<1x4x288xf32>
    %3 = vector.shape_cast %2 : vector<1x4x288xf32> to vector<4x288xf32>
    %c0_4 = arith.constant 0 : index
    %c0_5 = arith.constant 0 : index
    %c2 = arith.constant 2 : index
    %4 = vector.load %arg2[%c0_4, %c0_5, %c2] : memref<1x4x342xf32, #tpu.memory_space<vmem>>, vector<1x4x288xf32>
    %5 = vector.shape_cast %4 : vector<1x4x288xf32> to vector<4x288xf32>
    %c0_6 = arith.constant 0 : index
    %c0_7 = arith.constant 0 : index
    %c18 = arith.constant 18 : index
    %6 = vector.load %arg2[%c0_6, %c0_7, %c18] : memref<1x4x342xf32, #tpu.memory_space<vmem>>, vector<1x4x288xf32>
    %7 = vector.shape_cast %6 : vector<1x4x288xf32> to vector<4x288xf32>
    %c0_8 = arith.constant 0 : index
    %c0_9 = arith.constant 0 : index
    %c19 = arith.constant 19 : index
    %8 = vector.load %arg2[%c0_8, %c0_9, %c19] : memref<1x4x342xf32, #tpu.memory_space<vmem>>, vector<1x4x288xf32>
    %9 = vector.shape_cast %8 : vector<1x4x288xf32> to vector<4x288xf32>
    %c0_10 = arith.constant 0 : index
    %c0_11 = arith.constant 0 : index
    %c20 = arith.constant 20 : index
    %10 = vector.load %arg2[%c0_10, %c0_11, %c20] : memref<1x4x342xf32, #tpu.memory_space<vmem>>, vector<1x4x288xf32>
    %11 = vector.shape_cast %10 : vector<1x4x288xf32> to vector<4x288xf32>
    %c0_12 = arith.constant 0 : index
    %c0_13 = arith.constant 0 : index
    %c36 = arith.constant 36 : index
    %12 = vector.load %arg2[%c0_12, %c0_13, %c36] : memref<1x4x342xf32, #tpu.memory_space<vmem>>, vector<1x4x288xf32>
    %13 = vector.shape_cast %12 : vector<1x4x288xf32> to vector<4x288xf32>
    %c0_14 = arith.constant 0 : index
    %c0_15 = arith.constant 0 : index
    %c37 = arith.constant 37 : index
    %14 = vector.load %arg2[%c0_14, %c0_15, %c37] : memref<1x4x342xf32, #tpu.memory_space<vmem>>, vector<1x4x288xf32>
    %15 = vector.shape_cast %14 : vector<1x4x288xf32> to vector<4x288xf32>
    %c0_16 = arith.constant 0 : index
    %c0_17 = arith.constant 0 : index
    %c38 = arith.constant 38 : index
    %16 = vector.load %arg2[%c0_16, %c0_17, %c38] : memref<1x4x342xf32, #tpu.memory_space<vmem>>, vector<1x4x288xf32>
    %17 = vector.shape_cast %16 : vector<1x4x288xf32> to vector<4x288xf32>
    %18 = tpu.concatenate %1, %3, %5, %7, %9, %11, %13, %15, %17 in 0 : vector<4x288xf32>, vector<4x288xf32>, vector<4x288xf32>, vector<4x288xf32>, vector<4x288xf32>, vector<4x288xf32>, vector<4x288xf32>, vector<4x288xf32>, vector<4x288xf32> -> vector<36x288xf32>
    %19 = arith.truncf %18 : vector<36x288xf32> to vector<36x288xbf16>
    %c0_18 = arith.constant 0 : index
    %c0_19 = arith.constant 0 : index
    %c0_20 = arith.constant 0 : index
    %20 = vector.load %arg1[%c0_18, %c0_19, %c0_20] : memref<1x4x36xbf16, #tpu.memory_space<vmem>>, vector<1x4x36xbf16>
    %21 = vector.shape_cast %20 : vector<1x4x36xbf16> to vector<4x36xbf16>
    %cst = arith.constant dense<0.000000e+00> : vector<4x288xf32>
    %22 = tpu.matmul %21, %19, %cst {dimension_numbers = #tpu.dot_dimension_numbers<[1], [0], [0], [1], [0, 0, 1, 1], [], []>} : vector<4x36xbf16>, vector<36x288xbf16>, vector<4x288xf32> -> vector<4x288xf32>
    %c0_21 = arith.constant 0 : index
    %c0_22 = arith.constant 0 : index
    %c0_23 = arith.constant 0 : index
    %23 = vector.load %arg3[%c0_21, %c0_22, %c0_23] : memref<1x4x288xf32, #tpu.memory_space<vmem>>, vector<1x4x288xf32>
    %24 = vector.shape_cast %23 : vector<1x4x288xf32> to vector<4x288xf32>
    %25 = vector.shape_cast %22 : vector<4x288xf32> to vector<1x4x288xf32>
    tpu.vector_store %arg3[%c0_21, %c0_22, %c0_23], %25 {strides = array<i32>} : memref<1x4x288xf32, #tpu.memory_space<vmem>>, vector<1x4x288xf32>,
    return
  }
  func.func @transform_0(%arg0: i32) -> (i32, i32, i32) {
    %c0_i32 = arith.constant 0 : i32
    %c0_i32_0 = arith.constant 0 : i32
    %c0_i32_1 = arith.constant 0 : i32
    return %arg0, %c0_i32, %c0_i32_0 : i32, i32, i32
  }
  func.func @transform_1(%arg0: i32) -> (i32, i32, i32) {
    %c0_i32 = arith.constant 0 : i32
    %c0_i32_0 = arith.constant 0 : i32
    %c0_i32_1 = arith.constant 0 : i32
    return %arg0, %c0_i32, %c0_i32_0 : i32, i32, i32
  }
  func.func @transform_2(%arg0: i32) -> (i32, i32, i32) {
    %c0_i32 = arith.constant 0 : i32
    %c0_i32_0 = arith.constant 0 : i32
    %c0_i32_1 = arith.constant 0 : i32
    return %arg0, %c0_i32, %c0_i32_0 : i32, i32, i32
  }
}

</mosaic_0001>

<bundles_post_ra>
// kernel: tpu_custom_call.1
= control target key start
LH: loop header
LB: loop body
LE: loop exit
PB: predicated region body
PF: predicated region fallthrough
CT: control target
= control target key end

     0   :  { %7 = vsyncpa [#allocation3], 0  ;;  %s1059_s0 = inlined_call_operand.hbm [shape: bf16[2,4,36], index: 0, kind: input, shape index: {}]   ;;  %s1060_s1 = inlined_call_operand.hbm [shape: f32[2,4,342], index: 1, kind: input, shape index: {}]   ;;  %s1061_s2 = inlined_call_operand.hbm [shape: f32[2,4,288], index: 2, kind: output, shape index: {}]  }
   0x1   :  { %9 = vsyncpa [#allocation3 + $0x1], 0 }
   0x2   :  { %10 = vsyncpa [#allocation6], 0 }
   0x3   :  { %12 = vsyncpa [#allocation6 + $0x1], 0 }
   0x4   :  { %13 = vsyncpa [#allocation4], 0 }
   0x5   :  { %15 = vsyncpa [#allocation4 + $0x1], 0  ;;  %s829_s9 = smov 0   ;;  %s831_s10 = smov 0  }
   0x6   :  { %s833_s11 = smov 0   ;;  %s835_s12 = smov 0  }
   0x7 LB: > { %s850_s13 = sadd.s32 4294967295, %s804_s12   ;;  %s557_s14 = sadd.s32 4294967294, %s804_s12   ;;  %s804_s12 = sphi %s835_s12, %s1072_s12   ;;  %s800_s11 = sphi %s833_s11, %s1071_s11   ;;  %s796_s10 = sphi %s831_s10, %s1070_s10   ;;  %s792_s9 = sphi %s829_s9, %s1069_s9  }
   0x8   : > { %s854_s15 = sadd.s32 1, %s804_s12   ;;  %s28_s16 = sadd.s32 1, %s800_s11 }
   0x9   : > { %s25_s17 = ssub.s32 %s804_s12, %s854_s15  ;;  %p35_p0 = scmp.ne.s32.totalorder %s800_s11, %s796_s10 }
   0xa   : > { %p26_p1 = scmp.eq.s32.totalorder %s25_s17, 0  ;;  %p36_p2 = scmp.eq.s32.totalorder %s804_s12, 0 }
   0xb   : > { %p41_p3 = scmp.ne.s32.totalorder %s796_s10, %s792_s9  ;;  %p42_p4 = scmp.eq.s32.totalorder %s850_s13, 0 }
   0xc   : > { %s866_s18 = scalar_select %p26_p1, %s800_s11, %s28_s16  }
   0xd   : > { %p868_p5 = por %p36_p2, %p35_p0  ;;  %p872_p6 = por %p42_p4, %p41_p3 }
   0xe   : > { %p91_p7 = scmp.eq.s32.totalorder %s850_s13, 1  ;;  %p97_p8 = scmp.eq.s32.totalorder %s557_s14, 1 }
   0xf   : > { %p592_p10 = scmp.lt.s32.totalorder %s804_s12, 2  ;;  %s888_s23 = sand.u32 1, %s800_s11  }
  0x10   : > { %p879_p11 = por %p91_p7, %p35_p0  ;;  %p883_p12 = por %p97_p8, %p41_p3 }
  0x11   : > { %s561_s24 = sshll.u32 %s804_s12, 1  ;;  %s560_s25 = sshll.u32 %s888_s23, 1 }
  0x12   : > { %s125_s28 = scalar_lea.hbm %s1059_s0, %s561_s24  ;;  %s121_s30 = scalar_lea.vmem [#allocation2], %s560_s25 }
  0x13   : > { %s127_s29 = sshll.u32 %s125_s28, 4  ;;  %s129_s3 = sshll.u32 %s121_s30, 4  ;;  %s128_s29 = int_to_ptr.hbm [resolvable:$true] %s127_s29  ;;  %s130_s3 = int_to_ptr.vmem [resolvable:$true] %s129_s3 }
  0x14   : > { %p897_p13 = pnand %p592_p10, %p868_p5  ;;  %p563_p0 = scmp.ge.s32.totalorder %s804_s12, 1 }
  0x15   : > { %p154_p1 = scmp.lt.s32.totalorder %s804_s12, 3  ;;  %s571_s5 = smul.u32 12, %s888_s23 }
  0x16   : > { %s118_s6 = scalar_lea.sflag [#allocation3], %s888_s23  ;;  %s674_s7 = sshra.s32 %s128_s29, 4  ;;  %s675_s7 = int_to_ptr.hbm [resolvable:$true] %s674_s7 }
  0x17   : > { %s676_s8 = scalar_lea.hbm %s675_s7, 2  ;;  %p678_p3 = pneg %p897_p13 }
  0x18   : > { %p677_p2 = scmp.ne.s32.totalorder %s675_s7, %s676_s8  ;;  %s681_s17 = scalar_lea.hbm %s1059_s0, 4 }
  0x19   : > { %p682_p5 = scmp.lt.s32.totalorder %s675_s7, %s1059_s0  ;;  %p683_p8 = scmp.lt.s32.totalorder %s681_s17, %s676_s8 }
  0x1a   : > { %p679_p4 = pnand %p678_p3, %p677_p2 }
  0x1b   : > { %p684_p10 = por %p683_p8, %p682_p5 }
  0x1c   : > { %p680_p7 = pneg %p679_p4 }
  0x1e   : > { %p685_p9 = pnand %p684_p10, %p680_p7 }
  0x20   : > { %688 = shalt.err (!%p685_p9)
}
  0x21   : > { %584 = dma.hbm_to_vmem [thread:$0]  (!%p897_p13), %s128_s29, 32, %s130_s3, %s118_s6  }
  0x22   : > { %p922_p2 = pnand %p563_p0, %p154_p1  ;;  %s572_s26 = smul.u32 12, %s804_s12 }
  0x23   : > { %s140_s27 = scalar_lea.vmem [#allocation5], %s571_s5  ;;  %s137_s16 = scalar_lea.sflag [#allocation6], %s888_s23 }
  0x24   : > { %s149_s28 = sshll.u32 %s140_s27, 4  ;;  %s145_s8 = scalar_lea.hbm %s1060_s1, %s572_s26  ;;  %s150_s28 = int_to_ptr.vmem [resolvable:$true] %s149_s28 }
  0x25   : > { %s147_s14 = sshll.u32 %s145_s8, 4  ;;  %s711_s5 = scalar_lea.hbm %s1060_s1, 24  ;;  %s148_s14 = int_to_ptr.hbm [resolvable:$true] %s147_s14 }
  0x26   : > { %s704_s17 = sshra.s32 %s148_s14, 4  ;;  %s705_s17 = int_to_ptr.hbm [resolvable:$true] %s704_s17 }
  0x27   : > { %s706_s29 = scalar_lea.hbm %s705_s17, 12  ;;  %p712_p4 = scmp.lt.s32.totalorder %s705_s17, %s1060_s1 }
  0x28   : > { %p707_p9 = scmp.ne.s32.totalorder %s705_s17, %s706_s29  ;;  %p713_p7 = scmp.lt.s32.totalorder %s711_s5, %s706_s29 }
  0x2a   : > { %p709_p0 = pnand %p707_p9, %p678_p3  ;;  %p714_p5 = por %p713_p7, %p712_p4 }
  0x2c   : > { %p710_p1 = pneg %p709_p0 }
  0x2e   : > { %p715_p8 = pnand %p714_p5, %p710_p1 }
  0x30   : > { %718 = shalt.err (!%p715_p8)
}
  0x31   : > { %587 = dma.hbm_to_vmem [thread:$0]  (!%p897_p13), %s148_s14, 192, %s150_s28, %s137_s16  }
  0x32   : > { %158 = sbr.rel (%p922_p2) target bundleno = 408 (0x198), region = 28  ;;  %s945_s23 = sand.u32 (!%p922_p2), 1, %s796_s10  }
  0x33   : > { %s564_s26 = sshll.u32 (!%p922_p2), %s945_s23, 1  ;;  %s161_s27 = scalar_lea.sflag (!%p922_p2), [#allocation3], %s945_s23 }
  0x34   : > { %s949_s30 = scalar_lea.vmem (!%p922_p2), [#allocation2], %s564_s26 }
  0x37   : > { %779 = dma.done.wait (%p872_p6), %s161_s27, 32  }
  0x38   : > { %781 = vsyncadd (%p872_p6), %s161_s27, 4294967264  ;;  %s573_s4 = smul.u32 12, %s945_s23  ;;  %s171_s25 = scalar_lea.sflag [#allocation6], %s945_s23 }
  0x3a   : > { %s174_s28 = scalar_lea.vmem [#allocation5], %s573_s4 }
  0x3b   : > { %783 = dma.done.wait (%p872_p6), %s171_s25, 192  }
  0x3c   : > { %785 = vsyncadd (%p872_p6), %s171_s25, 4294967104  ;;  %v202_v0 = vld [vmem:[%s174_s28] sm:$0xff]  ;;  %v203_v1 = vld [vmem:[%s174_s28 + $0x8] sm:$0xf]  ;;  %s806_s20 = smov 127   ;;  %s807_s7 = smov 126  }
  0x3d   : > { %206 = vst [vmem:[#allocation1] ss:$2 sm:$0xff] %v202_v0  ;;  %s808_s8 = smov 110   ;;  %s809_s14 = smov 109   ;;  %vm357_vm0 = vcmask 736256   ;;  %vm283_vm1 = vcmask 891904  }
  0x3e   : > { %208 = vst [vmem:[#allocation1 + $0x10] ss:$2 sm:$0xff] %v203_v1  ;;  %s810_s16 = smov 108   ;;  %s811_s17 = smov 92   ;;  %vm390_vm2 = vcmask 1041408   ;;  %vm363_vm3 = vcmask 1043456  }
  0x3f   : > { %s812_s29 = smov 91   ;;  %s813_s3 = smov 90   ;;  %vm302_vm4 = vcmask 883712   ;;  %vm339_vm5 = vcmask 744448   ;;  %vm320_vm6 = vcmask 752640   ;;  %vm228_vm7 = vcmask 1039360  }
  0x40   : > { %vm246_vm8 = vcmask 1031168   ;;  %vm265_vm9 = vcmask 900096   ;;  %vm386_vm10 = vcmask 293888   ;;  %s574_s6 = smul.u32 12, %s850_s13  ;;  %vm445_vm11 = vcmask 257024   ;;  %s200_s26 = scalar_lea.vmem [#allocation7], %s573_s4 }
  0x41   : > { %s461_s27 = sshll.u32 %s200_s26, 4  ;;  %s448_s13 = scalar_lea.sflag [#allocation4], %s945_s23  ;;  %s462_s27 = int_to_ptr.vmem [resolvable:$true] %s461_s27 }
  0x42   : > { %s459_s24 = scalar_lea.hbm %s1061_s2, %s574_s6 }
  0x44   : > { %v963_v2 = vld.sshfl [vmem:[#allocation1] sm:$0xff pattern:$0x75316420]  ;;  %v965_v3 = vld.sshfl [vmem:[#allocation1 + $0x8] sm:$0xff pattern:$0x75316420] }
  0x45   : > { %v967_v4 = vld.sshfl [vmem:[#allocation1 + $0x10] sm:$0xff pattern:$0x75316420]  ;;  %216 = vst [vmem:[#allocation1 + $0x1] ss:$2 sm:$0xff] %v202_v0 }
  0x46   : > { %218 = vst [vmem:[#allocation1 + $0x11] ss:$2 sm:$0xff] %v203_v1 }
  0x4c   : > { %v219_v5 = vld.sshfl [vmem:[#allocation1] sm:$0xff pattern:$0x75316420]  ;;  %v220_v6 = vld.sshfl [vmem:[#allocation1 + $0x8] sm:$0xff pattern:$0x75316420] }
  0x4d   : > { %v221_v7 = vld.sshfl [vmem:[#allocation1 + $0x10] sm:$0xff pattern:$0x75316420]  ;;  %234 = vst [vmem:[#allocation1] ss:$2 sm:$0xff] %v202_v0 }
  0x4e   : > { %236 = vst [vmem:[#allocation1 + $0x10] ss:$2 sm:$0xff] %v203_v1  ;;  %v634_v8 = vpack.i.bf16 %v219_v5, %v221_v7 }
  0x50   : > { %635 = vrot.lane.b32.xlu0 %v634_v8, %s806_s20 }
  0x54   : > { %v237_v9 = vld.sshfl [vmem:[#allocation1] sm:$0xff pattern:$0x75316420]  ;;  %v238_v10 = vld.sshfl [vmem:[#allocation1 + $0x8] sm:$0xff pattern:$0x75316420] }
  0x55   : > { %v239_v11 = vld.sshfl [vmem:[#allocation1 + $0x10] sm:$0xff pattern:$0x75316420]  ;;  %253 = vst [vmem:[#allocation1 + $0x1] ss:$2 sm:$0xff] %v202_v0 }
  0x56   : > { %255 = vst [vmem:[#allocation1 + $0x11] ss:$2 sm:$0xff] %v203_v1  ;;  %v639_v12 = vpack.i.bf16 %v237_v9, %v239_v11 }
  0x58   : > { %640 = vrot.lane.b32.xlu1 %v639_v12, %s807_s7 }
  0x5c   : > { %v256_v13 = vld.sshfl [vmem:[#allocation1] sm:$0xff pattern:$0x75316420]  ;;  %v257_v14 = vld.sshfl [vmem:[#allocation1 + $0x8] sm:$0xff pattern:$0x75316420] }
  0x5d   : > { %v258_v15 = vld.sshfl [vmem:[#allocation1 + $0x10] sm:$0xff pattern:$0x75316420]  ;;  %271 = vst [vmem:[#allocation1] ss:$2 sm:$0xff] %v202_v0 }
  0x5e   : > { %273 = vst [vmem:[#allocation1 + $0x10] ss:$2 sm:$0xff] %v203_v1  ;;  %v644_v16 = vpack.i.bf16 %v256_v13, %v258_v15 }
  0x60   : > { %645 = vrot.lane.b32.xlu2 %v644_v16, %s808_s8 }
  0x64   : > { %v274_v17 = vld.sshfl [vmem:[#allocation1] sm:$0xff pattern:$0x75316420]  ;;  %v275_v18 = vld.sshfl [vmem:[#allocation1 + $0x8] sm:$0xff pattern:$0x75316420] }
  0x65   : > { %v276_v19 = vld.sshfl [vmem:[#allocation1 + $0x10] sm:$0xff pattern:$0x75316420]  ;;  %290 = vst [vmem:[#allocation1 + $0x1] ss:$2 sm:$0xff] %v202_v0 }
  0x66   : > { %292 = vst [vmem:[#allocation1 + $0x11] ss:$2 sm:$0xff] %v203_v1  ;;  %v649_v20 = vpack.i.bf16 %v274_v17, %v276_v19 }
  0x68   : > { %650 = vrot.lane.b32.xlu0 %v649_v20, %s809_s14 }
  0x6c   : > { %v293_v21 = vld.sshfl [vmem:[#allocation1] sm:$0xff pattern:$0x75316420]  ;;  %v294_v22 = vld.sshfl [vmem:[#allocation1 + $0x8] sm:$0xff pattern:$0x75316420] }
  0x6d   : > { %v295_v23 = vld.sshfl [vmem:[#allocation1 + $0x10] sm:$0xff pattern:$0x75316420]  ;;  %308 = vst [vmem:[#allocation1] ss:$2 sm:$0xff] %v202_v0 }
  0x6e   : > { %310 = vst [vmem:[#allocation1 + $0x10] ss:$2 sm:$0xff] %v203_v1  ;;  %v654_v24 = vpack.i.bf16 %v293_v21, %v295_v23 }
  0x70   : > { %655 = vrot.lane.b32.xlu1 %v654_v24, %s810_s16  ;;  %279 = vrot.lane.b32.xlu0 %v275_v18, %s809_s14 }
  0x74   : > { %v311_v25 = vld.sshfl [vmem:[#allocation1] sm:$0xff pattern:$0x75316420]  ;;  %v312_v26 = vld.sshfl [vmem:[#allocation1 + $0x8] sm:$0xff pattern:$0x75316420] }
  0x75   : > { %v313_v27 = vld.sshfl [vmem:[#allocation1 + $0x10] sm:$0xff pattern:$0x75316420]  ;;  %316 = vrot.lane.b32.xlu2 %v312_v26, %s811_s17  ;;  %327 = vst [vmem:[#allocation1 + $0x1] ss:$2 sm:$0xff] %v202_v0 }
  0x76   : > { %329 = vst [vmem:[#allocation1 + $0x11] ss:$2 sm:$0xff] %v203_v1  ;;  %v659_v28 = vpack.i.bf16 %v311_v25, %v313_v27 }
  0x78   : > { %660 = vrot.lane.b32.xlu1 %v659_v28, %s811_s17 }
  0x7c   : > { %v331_v29 = vld.sshfl [vmem:[#allocation1 + $0x8] sm:$0xff pattern:$0x75316420]  ;;  %v330_v30 = vld.sshfl [vmem:[#allocation1] sm:$0xff pattern:$0x75316420] }
  0x7d   : > { %v332_v31 = vld.sshfl [vmem:[#allocation1 + $0x10] sm:$0xff pattern:$0x75316420]  ;;  %345 = vst [vmem:[#allocation1] ss:$2 sm:$0xff] %v202_v0 }
  0x7e   : > { %347 = vst [vmem:[#allocation1 + $0x10] ss:$2 sm:$0xff] %v203_v1  ;;  %v664_v32 = vpack.i.bf16 %v330_v30, %v332_v31 }
  0x80   : > { %298 = vrot.lane.b32.xlu1 %v294_v22, %s810_s16  ;;  %665 = vrot.lane.b32.xlu2 %v664_v32, %s812_s29 }
  0x84   : > { %v348_v33 = vld.sshfl [vmem:[#allocation1] sm:$0xff pattern:$0x75316420]  ;;  %v349_v36 = vld.sshfl [vmem:[#allocation1 + $0x8] sm:$0xff pattern:$0x75316420] }
  0x85   : > { %v350_v34 = vld.sshfl [vmem:[#allocation1 + $0x10] sm:$0xff pattern:$0x75316420] }
  0x86   : > { %v669_v35 = vpack.i.bf16 %v348_v33, %v350_v34  ;;  %v385_v33 = vld [vmem:[%s949_s30] sm:$0x3]  ;;  %s463_s30 = sshll.u32 %s459_s24, 4  ;;  %s464_s30 = int_to_ptr.hbm [resolvable:$true] %s463_s30 }
  0x87   : > { %s748_s25 = sshra.s32 %s464_s30, 4  ;;  %s749_s25 = int_to_ptr.hbm [resolvable:$true] %s748_s25 }
  0x88   : > { %224 = vrot.lane.b32.xlu1 %v220_v6, %s806_s20  ;;  %670 = vrot.lane.b32.xlu0 %v669_v35, %s813_s3  ;;  %s750_s28 = scalar_lea.hbm %s749_s25, 12  ;;  %p755_p10 = scmp.lt.s32.totalorder %s749_s25, %s1061_s2 }
  0x89   : > { %353 = vrot.lane.b32.xlu2 %v349_v36, %s813_s3  ;;  %p751_p6 = scmp.ne.s32.totalorder %s749_s25, %s750_s28 }
  0x8b   : > { %p752_p13 = pnand %p751_p6, %p879_p11 }
  0x8d   : > { %p753_p3 = pneg %p752_p13 }
  0x90   : > { %335 = vrot.lane.b32.xlu0 %v331_v29, %s812_s29 }
  0x91   : > { %242 = vrot.lane.b32.xlu2 %v238_v10, %s807_s7  ;;  %s754_s7 = scalar_lea.hbm %s1061_s2, 24 }
  0x92   : > { %p756_p2 = scmp.lt.s32.totalorder %s754_s7, %s750_s28 }
  0x94   : > { %p757_p9 = por %p756_p2, %p755_p10 }
  0x96   : > { %p758_p0 = pnand %p757_p9, %p753_p3 }
  0x98   : > { %261 = vrot.lane.b32.xlu0 %v257_v14, %s808_s8 }
  0xba   : > { %v975_v37 = vpop.permute.xlu2 %645 }
  0xbb   : > { %v647_v46 = vunpack.i.l.bf16 %v975_v37  ;;  %v648_v34 = vunpack.i.h.bf16 %v975_v37 }
  0xc2   : > { %v979_v39 = vpop.permute.xlu0 %635 }
  0xc3   : > { %v637_v47 = vunpack.i.l.bf16 %v979_v39  ;;  %v638_v31 = vunpack.i.h.bf16 %v979_v39 }
  0xc5   : > { %v366_v13 = vsel %vm363_vm3, %v967_v4, %v637_v47 }
  0xca   : > { %v977_v38 = vpop.permute.xlu1 %640 }
  0xcb   : > { %v642_v55 = vunpack.i.l.bf16 %v977_v38  ;;  %v643_v30 = vunpack.i.h.bf16 %v977_v38 }
  0xcd   : > { %v369_v18 = vsel %vm363_vm3, %v642_v55, %v647_v46 }
  0xce   : > { %v378_v29 = vpack.c.bf16 %v369_v18, %v366_v13 }
  0xcf   : > { %v317_v40 = vpop.permute.xlu2 %316 }
  0xda   : > { %v651_v42 = vpop.permute.xlu0 %650  ;;  %v666_v43 = vpop.permute.xlu2 %665 }
  0xdb   : > { %v667_v48 = vunpack.i.l.bf16 %v666_v43  ;;  %v652_v49 = vunpack.i.l.bf16 %v651_v42  ;;  %v653_v62 = vunpack.i.h.bf16 %v651_v42  ;;  %v668_v10 = vunpack.i.h.bf16 %v666_v43 }
  0xe2   : > { %v656_v41 = vpop.permute.xlu1 %655  ;;  %v280_v45 = vpop.permute.xlu0 %279 }
  0xe3   : > { %v657_v51 = vunpack.i.l.bf16 %v656_v41  ;;  %v354_v56 = vpop.permute.xlu2 %353  ;;  %v658_v58 = vunpack.i.h.bf16 %v656_v41  ;;  %v284_v14 = vsel %vm283_vm1, %v653_v62, %v280_v45  ;;  %v285_v15 = vsel %vm283_vm1, %v280_v45, %v652_v49 }
  0xe5   : > { %v372_v6 = vsel %vm363_vm3, %v652_v49, %v657_v51 }
  0xea   : > { %v661_v44 = vpop.permute.xlu1 %660 }
  0xeb   : > { %v662_v52 = vunpack.i.l.bf16 %v661_v44  ;;  %v663_v1 = vunpack.i.h.bf16 %v661_v44  ;;  %v243_v32 = vpop.permute.xlu2 %242 }
  0xec   : > { %v247_v41 = vsel %vm246_vm8, %v643_v30, %v243_v32  ;;  %v248_v42 = vsel %vm246_vm8, %v243_v32, %v642_v55 }
  0xed   : > { %v375_v7 = vsel %vm363_vm3, %v662_v52, %v667_v48  ;;  %v321_v21 = vsel %vm320_vm6, %v663_v1, %v317_v40  ;;  %v322_v22 = vsel %vm320_vm6, %v317_v40, %v662_v52 }
  0xee   : > { %v381_v17 = vpack.c.bf16 %v375_v7, %v372_v6 }
  0xf2   : > { %v299_v57 = vpop.permute.xlu1 %298 }
  0xf3   : > { %v303_v11 = vsel %vm302_vm4, %v658_v58, %v299_v57  ;;  %v304_v12 = vsel %vm302_vm4, %v299_v57, %v657_v51 }
  0xf4   : > { %v370_v23 = vsel %vm363_vm3, %v284_v14, %v303_v11  ;;  %v371_v24 = vsel %vm363_vm3, %v285_v15, %v304_v12 }
  0xfa   : > { %v671_v50 = vpop.permute.xlu0 %670  ;;  %v225_v28 = vpop.permute.xlu1 %224 }
  0xfb   : > { %v673_v53 = vunpack.i.h.bf16 %v671_v50  ;;  %v672_v54 = vunpack.i.l.bf16 %v671_v50  ;;  %v229_v35 = vsel %vm228_vm7, %v638_v31, %v225_v28  ;;  %v230_v36 = vsel %vm228_vm7, %v225_v28, %v637_v47 }
  0xfc   : > { %v364_v45 = vsel %vm363_vm3, %v963_v2, %v229_v35  ;;  %v365_v39 = vsel %vm363_vm3, %v965_v3, %v230_v36 }
  0xfd   : > { %v384_v59 = vpack.c.bf16 %v672_v54, %v672_v54  ;;  %v358_v60 = vsel %vm357_vm0, %v673_v53, %v354_v56  ;;  %v359_v61 = vsel %vm357_vm0, %v354_v56, %v672_v54 }
  0xfe   : > { %v382_v63 = vpack.c.bf16 %v358_v60, %v358_v60  ;;  %v383_v0 = vpack.c.bf16 %v359_v61, %v359_v61 }
  0xff   : > { %v398_v5 = vsel %vm390_vm2, %v384_v59, 0 }
 0x100   : > { %431 = vmatpush.bf16.msra.mxu2 %v398_v5  ;;  %v392_v8 = vsel %vm390_vm2, %v382_v63, 0  ;;  %v395_v9 = vsel %vm390_vm2, %v383_v0, 0 }
 0x101   : > { %405 = vmatpush.bf16.msra.mxu0 %v392_v8  ;;  %418 = vmatpush.bf16.msra.mxu1 %v395_v9 }
 0x102   : > { %v336_v16 = vpop.permute.xlu0 %335 }
 0x103   : > { %v340_v19 = vsel %vm339_vm5, %v668_v10, %v336_v16  ;;  %v341_v20 = vsel %vm339_vm5, %v336_v16, %v667_v48 }
 0x104   : > { %432 = vmatpush.bf16.msra.mxu2 %v381_v17  ;;  %v373_v4 = vsel %vm363_vm3, %v321_v21, %v340_v19  ;;  %v374_v25 = vsel %vm363_vm3, %v322_v22, %v341_v20 }
 0x105   : > { %v379_v26 = vpack.c.bf16 %v373_v4, %v370_v23  ;;  %v380_v27 = vpack.c.bf16 %v374_v25, %v371_v24 }
 0x107   : > { %406 = vmatpush.bf16.msra.mxu0 %v379_v26  ;;  %419 = vmatpush.bf16.msra.mxu1 %v380_v27 }
 0x108   : > { %433 = vmatpush.bf16.msra.mxu2 %v378_v29 }
 0x10a   : > { %v262_v40 = vpop.permute.xlu0 %261 }
 0x10b   : > { %v266_v43 = vsel %vm265_vm9, %v648_v34, %v262_v40  ;;  %v267_v44 = vsel %vm265_vm9, %v262_v40, %v647_v46  ;;  %567 = vmatmul.msk.bf16.vlgmr.msra.gmra.mxu2 %vm386_vm10, %v385_v33 }
 0x10c   : > { %v367_v48 = vsel %vm363_vm3, %v247_v41, %v266_v43  ;;  %v368_v47 = vsel %vm363_vm3, %v248_v42, %v267_v44 }
 0x10d   : > { %v376_v49 = vpack.c.bf16 %v367_v48, %v364_v45  ;;  %v377_v38 = vpack.c.bf16 %v368_v47, %v365_v39 }
 0x10f   : > { %407 = vmatpush.bf16.msra.mxu0 %v376_v49  ;;  %420 = vmatpush.bf16.msra.mxu1 %v377_v38 }
 0x112   : > { %565 = vmatmul.msk.bf16.vlgmr.msra.gmra.mxu0 %vm386_vm10, %v385_v33  ;;  %566 = vmatmul.msk.bf16.vlgmr.msra.gmra.mxu1 %vm386_vm10, %v385_v33 }
 0x18e   : > { %v435_v2 = vpop.f32.mrf.mxu2 }
 0x18f   : > { %446 = vst.msk [vmem:[%s200_s26 + $0x8] sm:$0xf] %vm445_vm11, %v435_v2  ;;  %v409_v3 = vpop.f32.mrf.mxu0  ;;  %v422_v37 = vpop.f32.mrf.mxu1 }
 0x190   : > { %v441_v46 = vrot.slane %v422_v37, 4 }
 0x192   : > { %v442_v50 = vsel %vm363_vm3, %v409_v3, %v441_v46 }
 0x193   : > { %444 = vst [vmem:[%s200_s26] sm:$0xff] %v442_v50 }
 0x194   : > { %761 = shalt.err (!%p758_p0)
}
 0x195   : > { %579 = dma.vmem_to_hbm [thread:$0]  (%p879_p11), %s462_s27, 192, %s464_s30, %s448_s13  }
 0x196   : > { %v437_v51 = vpop.f32.mrf.mxu2 }
 0x197   : > { %v411_v52 = vpop.f32.mrf.mxu0  ;;  %v424_v53 = vpop.f32.mrf.mxu1 }
 0x198 PF: > { %s475_s23 = sand.u32 1, %s792_s9   ;;  %p1068_p1 = scmp.ge.s32.totalorder %s804_s12, 2 }
 0x199   : > { %s476_s16 = scalar_lea.sflag [#allocation4], %s475_s23 }
 0x19a   : > { %p589_p4 = pnand %p1068_p1, %p883_p12 }
 0x19c   : > { %p590_p7 = pneg %p589_p4 }
 0x19e   : > { %787 = dma.done.wait (%p590_p7), %s476_s16, 192  }
 0x19f   : > { %789 = vsyncadd (%p590_p7), %s476_s16, 4294967104  ;;  %p18_p11 = scmp.ge.s32.totalorder %s854_s15, 4   ;;  %s1069_s9 = smov %s796_s10 }
 0x1a0   : > { %s1070_s10 = smov %s800_s11  ;;  %s1071_s11 = smov %s866_s18 }
 0x1a1   : > { %s1072_s12 = smov %s854_s15  ;;  %20 = sbr.rel (!%p18_p11) target bundleno = 7 (0x7), region = 99 }
 0x1a6   :  { %482 = vsyncpa [#allocation3], 1 }
 0x1a7   :  { %484 = vsyncpa [#allocation3 + $0x1], 1 }
 0x1a8   :  { %485 = vsyncpa [#allocation6], 1 }
 0x1a9   :  { %487 = vsyncpa [#allocation6 + $0x1], 1 }
 0x1aa   :  { %488 = vsyncpa [#allocation4], 1 }
 0x1ab   :  { %490 = vsyncpa [#allocation4 + $0x1], 1 }

</bundles_post_ra>
